<compile_context>
chip_gen: v5e
topology: v5e:2x2
jax: 0.10.0
libtpu: 0.0.40
codegen_flags: <defaults>
</compile_context>

<pallas_src>
import math

import jax
import jax.numpy as jnp
from jax.experimental import pallas as pl
from jax.experimental.pallas import tpu as pltpu


def _round_up(n: int, m: int) -> int:
    return ((n + m - 1) // m) * m


def ffn_kernel(x_ref, w1_ref, b1_ref, w2_ref, b2_ref, o_ref):
    # x_ref: (TM, Dp) bf16   w1_ref: (Dp, Hp) bf16   b1_ref: (1, Hp) f32
    # w2_ref: (Hp, Dp) bf16  b2_ref: (1, Dp) f32     o_ref: (TM, Dp) f32
    h = jnp.dot(x_ref[...], w1_ref[...],
                preferred_element_type=jnp.float32) + b1_ref[...]
    h = jnp.maximum(h, 0.0)
    h = (h * h).astype(jnp.bfloat16)          # SquaredReLU, fused bf16 downcast
    y = jnp.dot(h, w2_ref[...],
                preferred_element_type=jnp.float32) + b2_ref[...]
    # TODO(synk): nn.Dropout(p=0.05) treated as identity (inference/eval).
    o_ref[...] = y.astype(o_ref.dtype)


def _resident_spec(block_shape, use_buffered):
    """BlockSpec for a grid-invariant operand (stays resident in VMEM)."""
    index_map = lambda i: (0,) * len(block_shape)
    if use_buffered:
        # Single buffer: the index_map is constant, so double buffering only
        # wastes VMEM and DMA scheduling.
        return pl.BlockSpec(block_shape, index_map, pipeline_mode=pl.Buffered(1))
    return pl.BlockSpec(block_shape, index_map)


def ffn_forward(x, params, *, expansion: int = 4, row_tile: int = 512):
    """Pallas FFN forward pass. x: (..., embed_dim)."""
    orig_shape = x.shape
    D = orig_shape[-1]
    H = D * expansion
    M = math.prod(orig_shape[:-1])

    # --- Lane-dense packing: fold G = 128 // D logical rows into one 128-lane
    #     row when D divides 128; otherwise fall back to the plain layout.
    G = 128 // D if (D < 128 and 128 % D == 0) else 1
    Dp, Hp = D * G, H * G

    x2 = x.reshape(M, D).astype(jnp.bfloat16)
    M1 = _round_up(M, G)
    if M1 != M:
        x2 = jnp.pad(x2, ((0, M1 - M), (0, 0)))
    Mq = M1 // G                      # packed row count
    xq = x2.reshape(Mq, Dp)

    # --- Row-tile selection over packed rows.
    if Mq <= 2 * row_tile:
        # Small-M regime: minimize padding and per-step overhead.  Use 2 grid
        # steps when there is enough work to split (both v7x cores get a tile).
        n_steps = 2 if Mq >= 16 else 1
        TM = _round_up(max(pl.cdiv(Mq, n_steps), 8), 8)
    else:
        TM = row_tile
    Mp = _round_up(Mq, TM)
    if Mp != Mq:
        xq = jnp.pad(xq, ((0, Mp - Mq), (0, 0)))

    # --- Weights: (in, out) layout; block-diagonal expansion when packed;
    #     bf16 weights, f32 biases.
    w1_t = params["w1"].T             # (D, H)
    w2_t = params["w2"].T             # (H, D)
    b1 = params["b1"]
    b2 = params["b2"]
    if G > 1:
        eye = jnp.eye(G, dtype=w1_t.dtype)
        w1_t = jnp.kron(eye, w1_t)    # (Dp, Hp) block-diagonal
        w2_t = jnp.kron(eye, w2_t)    # (Hp, Dp) block-diagonal
        b1 = jnp.tile(b1, G)
        b2 = jnp.tile(b2, G)
    w1_b = w1_t.astype(jnp.bfloat16)
    w2_b = w2_t.astype(jnp.bfloat16)
    b1 = b1.reshape(1, Hp).astype(jnp.float32)
    b2 = b2.reshape(1, Dp).astype(jnp.float32)

    # --- Generation-aware VMEM budget with headroom below physical capacity.
    est = (2 * TM * Dp * 2                      # x tiles (bf16, double-buffered)
           + 2 * TM * Dp * 4                    # out tiles (f32, double-buffered)
           + 2 * (Dp * Hp + Hp * Dp) * 2        # weights (worst case 2 buffers)
           + 2 * (Hp + Dp) * 4                  # biases
           + TM * Hp * 4)                       # hidden intermediate
    try:
        cap = int(pltpu.get_tpu_info().vmem_capacity_bytes)
    except Exception:
        cap = 64 * 1024 * 1024                  # conservative (v7x per-core)
    headroom_cap = max(cap - 12 * 1024 * 1024, 8 * 1024 * 1024)
    vmem_limit = int(min(max(2 * est, 8 * 1024 * 1024), headroom_cap))

    out_shape = jax.ShapeDtypeStruct((Mp, Dp), x.dtype)
    x_spec = pl.BlockSpec((TM, Dp), lambda i: (i, 0))
    out_spec = pl.BlockSpec((TM, Dp), lambda i: (i, 0))

    def run(use_buffered):
        return pl.pallas_call(
            ffn_kernel,
            out_shape=out_shape,
            grid=(Mp // TM,),
            in_specs=[
                x_spec,                                   # x row tile (varies)
                _resident_spec((Dp, Hp), use_buffered),   # W1^T (resident)
                _resident_spec((1, Hp), use_buffered),    # b1
                _resident_spec((Hp, Dp), use_buffered),   # W2^T (resident)
                _resident_spec((1, Dp), use_buffered),    # b2
            ],
            out_specs=out_spec,
            compiler_params=pltpu.CompilerParams(
                dimension_semantics=("parallel",),
                vmem_limit_bytes=vmem_limit,
            ),
        )(xq, w1_b, b1, w2_b, b2)

    try:
        out = run(True)
    except Exception:
        # Fallback if this jax/Mosaic version rejects Buffered(1): default
        # double-buffered specs are functionally identical (just more VMEM).
        out = run(False)

    out = out[:Mq].reshape(M1, D)[:M]
    return out.reshape(orig_shape)


def reference_bf16(x, params):
    """Pure-JAX reference using the same bf16-weight / f32-accumulate recipe."""
    w1_t = params["w1"].T.astype(jnp.bfloat16)
    w2_t = params["w2"].T.astype(jnp.bfloat16)
    h = jnp.dot(x.astype(jnp.bfloat16), w1_t,
                preferred_element_type=jnp.float32) + params["b1"]
    h = jnp.maximum(h, 0.0) ** 2
    return jnp.dot(h.astype(jnp.bfloat16), w2_t,
                   preferred_element_type=jnp.float32) + params["b2"]


def reference_f32(x, params):
    """Full-precision reference mirroring the PyTorch module (dropout=identity)."""
    h = x @ params["w1"].T + params["b1"]
    h = jnp.maximum(h, 0.0) ** 2
    return h @ params["w2"].T + params["b2"]


def init_params(key, embed_dim, expansion):
    hidden = embed_dim * expansion
    ks = jax.random.split(key, 4)
    s = 0.1
    return {
        "w1": s * jax.random.normal(ks[0], (hidden, embed_dim), jnp.float32),
        "b1": s * jax.random.normal(ks[1], (hidden,), jnp.float32),
        "w2": s * jax.random.normal(ks[2], (embed_dim, hidden), jnp.float32),
        "b2": s * jax.random.normal(ks[3], (embed_dim,), jnp.float32),
    }


if __name__ == "__main__":
    key = jax.random.PRNGKey(0)
    kp, kx1, kx2 = jax.random.split(key, 3)

    EMBED, EXPANSION = 32, 4
    params = init_params(kp, EMBED, EXPANSION)

    # Small shape consistent with the module: (batch, seq, embed_dim).
    x_small = jax.random.normal(kx1, (2, 8, EMBED), jnp.float32)
    out_small = jax.block_until_ready(ffn_forward(x_small, params, expansion=EXPANSION))
    assert out_small.shape == x_small.shape
    assert jnp.allclose(out_small, reference_bf16(x_small, params), atol=2e-3, rtol=2e-3), \
        "mismatch vs bf16-matched reference"
    assert jnp.allclose(out_small, reference_f32(x_small, params), atol=1e-1, rtol=1e-1), \
        "mismatch vs f32 reference"

    # Larger shape exercising multi-step grid + row padding (M=400 -> 100
    # packed 128-lane rows -> two 56-row tiles).
    x_big = jax.random.normal(kx2, (4, 100, EMBED), jnp.float32)
    out_big = jax.block_until_ready(ffn_forward(x_big, params, expansion=EXPANSION))
    assert out_big.shape == x_big.shape
    assert jnp.allclose(out_big, reference_bf16(x_big, params), atol=2e-3, rtol=2e-3), \
        "mismatch vs bf16-matched reference (big)"

    print("KERNEL_OK")
</pallas_src>

<mosaic_0001>
module attributes {stable_mosaic.version = 11 : i64} {
  func.func @ffn_kernel(%arg0: i32, %arg1: memref<8x128xbf16, #tpu.memory_space<vmem>>, %arg2: memref<128x512xbf16, #tpu.memory_space<vmem>>, %arg3: memref<1x512xf32, #tpu.memory_space<vmem>>, %arg4: memref<512x128xbf16, #tpu.memory_space<vmem>>, %arg5: memref<1x128xf32, #tpu.memory_space<vmem>>, %arg6: memref<8x128xf32, #tpu.memory_space<vmem>>) attributes {dimension_semantics = [#tpu.dimension_semantics<parallel>], iteration_bounds = array<i64: 1>, scalar_prefetch = 0 : i64, scratch_operands = 0 : i64, tpu.core_type = #tpu.core_type<tc>, window_params = [{transform_indices = @transform_0, window_bounds = array<i64: 8, 128>}, {pipeline_mode = #tpu.pipeline_mode<synchronous>, transform_indices = @transform_1, window_bounds = array<i64: 128, 512>}, {pipeline_mode = #tpu.pipeline_mode<synchronous>, transform_indices = @transform_2, window_bounds = array<i64: 1, 512>}, {pipeline_mode = #tpu.pipeline_mode<synchronous>, transform_indices = @transform_3, window_bounds = array<i64: 512, 128>}, {pipeline_mode = #tpu.pipeline_mode<synchronous>, transform_indices = @transform_4, window_bounds = array<i64: 1, 128>}, {transform_indices = @transform_5, window_bounds = array<i64: 8, 128>}]} {
    %c0 = arith.constant 0 : index
    %c0_0 = arith.constant 0 : index
    %0 = vector.load %arg1[%c0, %c0_0] : memref<8x128xbf16, #tpu.memory_space<vmem>>, vector<8x128xbf16>
    %c0_1 = arith.constant 0 : index
    %c0_2 = arith.constant 0 : index
    %1 = vector.load %arg2[%c0_1, %c0_2] : memref<128x512xbf16, #tpu.memory_space<vmem>>, vector<128x512xbf16>
    %cst = arith.constant dense<0.000000e+00> : vector<8x512xf32>
    %2 = tpu.matmul %0, %1, %cst {dimension_numbers = #tpu.dot_dimension_numbers<[1], [0], [0], [1], [0, 0, 1, 1], [], []>} : vector<8x128xbf16>, vector<128x512xbf16>, vector<8x512xf32> -> vector<8x512xf32>
    %c0_3 = arith.constant 0 : index
    %c0_4 = arith.constant 0 : index
    %3 = vector.load %arg3[%c0_3, %c0_4] : memref<1x512xf32, #tpu.memory_space<vmem>>, vector<1x512xf32>
    %4 = vector.broadcast %3 : vector<1x512xf32> to vector<8x512xf32>
    %5 = arith.addf %2, %4 : vector<8x512xf32>
    %cst_5 = arith.constant 0.000000e+00 : f32
    %6 = vector.broadcast %cst_5 : f32 to vector<8x512xf32>
    %7 = arith.maximumf %5, %6 : vector<8x512xf32>
    %8 = arith.mulf %7, %7 : vector<8x512xf32>
    %9 = arith.truncf %8 : vector<8x512xf32> to vector<8x512xbf16>
    %c0_6 = arith.constant 0 : index
    %c0_7 = arith.constant 0 : index
    %10 = vector.load %arg4[%c0_6, %c0_7] : memref<512x128xbf16, #tpu.memory_space<vmem>>, vector<512x128xbf16>
    %cst_8 = arith.constant dense<0.000000e+00> : vector<8x128xf32>
    %11 = tpu.matmul %9, %10, %cst_8 {dimension_numbers = #tpu.dot_dimension_numbers<[1], [0], [0], [1], [0, 0, 1, 1], [], []>} : vector<8x512xbf16>, vector<512x128xbf16>, vector<8x128xf32> -> vector<8x128xf32>
    %c0_9 = arith.constant 0 : index
    %c0_10 = arith.constant 0 : index
    %12 = vector.load %arg5[%c0_9, %c0_10] : memref<1x128xf32, #tpu.memory_space<vmem>>, vector<1x128xf32>
    %13 = vector.broadcast %12 : vector<1x128xf32> to vector<8x128xf32>
    %14 = arith.addf %11, %13 : vector<8x128xf32>
    %c0_11 = arith.constant 0 : index
    %c0_12 = arith.constant 0 : index
    %15 = vector.load %arg6[%c0_11, %c0_12] : memref<8x128xf32, #tpu.memory_space<vmem>>, vector<8x128xf32>
    tpu.vector_store %arg6[%c0_11, %c0_12], %14 {strides = array<i32>} : memref<8x128xf32, #tpu.memory_space<vmem>>, vector<8x128xf32>,
    return
  }
  func.func @transform_0(%arg0: i32) -> (i32, i32) {
    %c0_i32 = arith.constant 0 : i32
    %c0_i32_0 = arith.constant 0 : i32
    return %arg0, %c0_i32 : i32, i32
  }
  func.func @transform_1(%arg0: i32) -> (i32, i32) {
    %c0_i32 = arith.constant 0 : i32
    %c0_i32_0 = arith.constant 0 : i32
    %c0_i32_1 = arith.constant 0 : i32
    return %c0_i32, %c0_i32_0 : i32, i32
  }
  func.func @transform_2(%arg0: i32) -> (i32, i32) {
    %c0_i32 = arith.constant 0 : i32
    %c0_i32_0 = arith.constant 0 : i32
    %c0_i32_1 = arith.constant 0 : i32
    return %c0_i32, %c0_i32_0 : i32, i32
  }
  func.func @transform_3(%arg0: i32) -> (i32, i32) {
    %c0_i32 = arith.constant 0 : i32
    %c0_i32_0 = arith.constant 0 : i32
    %c0_i32_1 = arith.constant 0 : i32
    return %c0_i32, %c0_i32_0 : i32, i32
  }
  func.func @transform_4(%arg0: i32) -> (i32, i32) {
    %c0_i32 = arith.constant 0 : i32
    %c0_i32_0 = arith.constant 0 : i32
    %c0_i32_1 = arith.constant 0 : i32
    return %c0_i32, %c0_i32_0 : i32, i32
  }
  func.func @transform_5(%arg0: i32) -> (i32, i32) {
    %c0_i32 = arith.constant 0 : i32
    %c0_i32_0 = arith.constant 0 : i32
    return %arg0, %c0_i32 : i32, i32
  }
}

module attributes {stable_mosaic.version = 11 : i64} {
  func.func @ffn_kernel(%arg0: i32, %arg1: memref<8x128xbf16, #tpu.memory_space<vmem>>, %arg2: memref<128x512xbf16, #tpu.memory_space<vmem>>, %arg3: memref<1x512xf32, #tpu.memory_space<vmem>>, %arg4: memref<512x128xbf16, #tpu.memory_space<vmem>>, %arg5: memref<1x128xf32, #tpu.memory_space<vmem>>, %arg6: memref<8x128xf32, #tpu.memory_space<vmem>>) attributes {dimension_semantics = [#tpu.dimension_semantics<parallel>], iteration_bounds = array<i64: 1>, scalar_prefetch = 0 : i64, scratch_operands = 0 : i64, tpu.core_type = #tpu.core_type<tc>, window_params = [{transform_indices = @transform_0, window_bounds = array<i64: 8, 128>}, {pipeline_mode = #tpu.pipeline_mode<synchronous>, transform_indices = @transform_1, window_bounds = array<i64: 128, 512>}, {pipeline_mode = #tpu.pipeline_mode<synchronous>, transform_indices = @transform_2, window_bounds = array<i64: 1, 512>}, {pipeline_mode = #tpu.pipeline_mode<synchronous>, transform_indices = @transform_3, window_bounds = array<i64: 512, 128>}, {pipeline_mode = #tpu.pipeline_mode<synchronous>, transform_indices = @transform_4, window_bounds = array<i64: 1, 128>}, {transform_indices = @transform_5, window_bounds = array<i64: 8, 128>}]} {
    %c0 = arith.constant 0 : index
    %c0_0 = arith.constant 0 : index
    %0 = vector.load %arg1[%c0, %c0_0] : memref<8x128xbf16, #tpu.memory_space<vmem>>, vector<8x128xbf16>
    %c0_1 = arith.constant 0 : index
    %c0_2 = arith.constant 0 : index
    %1 = vector.load %arg2[%c0_1, %c0_2] : memref<128x512xbf16, #tpu.memory_space<vmem>>, vector<128x512xbf16>
    %cst = arith.constant dense<0.000000e+00> : vector<8x512xf32>
    %2 = tpu.matmul %0, %1, %cst {dimension_numbers = #tpu.dot_dimension_numbers<[1], [0], [0], [1], [0, 0, 1, 1], [], []>} : vector<8x128xbf16>, vector<128x512xbf16>, vector<8x512xf32> -> vector<8x512xf32>
    %c0_3 = arith.constant 0 : index
    %c0_4 = arith.constant 0 : index
    %3 = vector.load %arg3[%c0_3, %c0_4] : memref<1x512xf32, #tpu.memory_space<vmem>>, vector<1x512xf32>
    %4 = vector.broadcast %3 : vector<1x512xf32> to vector<8x512xf32>
    %5 = arith.addf %2, %4 : vector<8x512xf32>
    %cst_5 = arith.constant 0.000000e+00 : f32
    %6 = vector.broadcast %cst_5 : f32 to vector<8x512xf32>
    %7 = arith.maximumf %5, %6 : vector<8x512xf32>
    %8 = arith.mulf %7, %7 : vector<8x512xf32>
    %9 = arith.truncf %8 : vector<8x512xf32> to vector<8x512xbf16>
    %c0_6 = arith.constant 0 : index
    %c0_7 = arith.constant 0 : index
    %10 = vector.load %arg4[%c0_6, %c0_7] : memref<512x128xbf16, #tpu.memory_space<vmem>>, vector<512x128xbf16>
    %cst_8 = arith.constant dense<0.000000e+00> : vector<8x128xf32>
    %11 = tpu.matmul %9, %10, %cst_8 {dimension_numbers = #tpu.dot_dimension_numbers<[1], [0], [0], [1], [0, 0, 1, 1], [], []>} : vector<8x512xbf16>, vector<512x128xbf16>, vector<8x128xf32> -> vector<8x128xf32>
    %c0_9 = arith.constant 0 : index
    %c0_10 = arith.constant 0 : index
    %12 = vector.load %arg5[%c0_9, %c0_10] : memref<1x128xf32, #tpu.memory_space<vmem>>, vector<1x128xf32>
    %13 = vector.broadcast %12 : vector<1x128xf32> to vector<8x128xf32>
    %14 = arith.addf %11, %13 : vector<8x128xf32>
    %c0_11 = arith.constant 0 : index
    %c0_12 = arith.constant 0 : index
    %15 = vector.load %arg6[%c0_11, %c0_12] : memref<8x128xf32, #tpu.memory_space<vmem>>, vector<8x128xf32>
    tpu.vector_store %arg6[%c0_11, %c0_12], %14 {strides = array<i32>} : memref<8x128xf32, #tpu.memory_space<vmem>>, vector<8x128xf32>,
    return
  }
  func.func @transform_0(%arg0: i32) -> (i32, i32) {
    %c0_i32 = arith.constant 0 : i32
    %c0_i32_0 = arith.constant 0 : i32
    return %arg0, %c0_i32 : i32, i32
  }
  func.func @transform_1(%arg0: i32) -> (i32, i32) {
    %c0_i32 = arith.constant 0 : i32
    %c0_i32_0 = arith.constant 0 : i32
    %c0_i32_1 = arith.constant 0 : i32
    return %c0_i32, %c0_i32_0 : i32, i32
  }
  func.func @transform_2(%arg0: i32) -> (i32, i32) {
    %c0_i32 = arith.constant 0 : i32
    %c0_i32_0 = arith.constant 0 : i32
    %c0_i32_1 = arith.constant 0 : i32
    return %c0_i32, %c0_i32_0 : i32, i32
  }
  func.func @transform_3(%arg0: i32) -> (i32, i32) {
    %c0_i32 = arith.constant 0 : i32
    %c0_i32_0 = arith.constant 0 : i32
    %c0_i32_1 = arith.constant 0 : i32
    return %c0_i32, %c0_i32_0 : i32, i32
  }
  func.func @transform_4(%arg0: i32) -> (i32, i32) {
    %c0_i32 = arith.constant 0 : i32
    %c0_i32_0 = arith.constant 0 : i32
    %c0_i32_1 = arith.constant 0 : i32
    return %c0_i32, %c0_i32_0 : i32, i32
  }
  func.func @transform_5(%arg0: i32) -> (i32, i32) {
    %c0_i32 = arith.constant 0 : i32
    %c0_i32_0 = arith.constant 0 : i32
    return %arg0, %c0_i32 : i32, i32
  }
}

</mosaic_0001>

<bundles_post_ra>
// kernel: tpu_custom_call.1
= control target key start
LH: loop header
LB: loop body
LE: loop exit
PB: predicated region body
PF: predicated region fallthrough
CT: control target
= control target key end

     0   :  { %10 = vsyncpa [#allocation3], 0  ;;  %s1194_s0 = inlined_call_operand.hbm [shape: bf16[8,128], index: 0, kind: input, shape index: {}]   ;;  %s1195_s1 = inlined_call_operand.hbm [shape: bf16[128,512], index: 1, kind: input, shape index: {}]   ;;  %s1196_s2 = inlined_call_operand.hbm [shape: f32[1,512], index: 2, kind: input, shape index: {}]   ;;  %s1197_s3 = inlined_call_operand.hbm [shape: bf16[512,128], index: 3, kind: input, shape index: {}]   ;;  %s1198_s4 = inlined_call_operand.vmem [shape: f32[1,128], index: 4, kind: input, shape index: {}]   ;;  %s1199_s5 = inlined_call_operand.hbm [shape: f32[8,128], index: 5, kind: output, shape index: {}]  }
   0x1   :  { %11 = vsyncpa [#allocation6], 0 }
   0x2   :  { %12 = vsyncpa [#allocation9], 0  ;;  %s29_s20 = sshll.u32 %s1195_s1, 4  ;;  %s30_s20 = int_to_ptr.hbm [resolvable:$true] %s29_s20 }
   0x3   :  { %13 = vsyncpa [#allocation4], 0  ;;  %s1137_s21 = smov [#allocation5]   ;;  %s19_s25 = sshll.u32 %s1194_s0, 4  ;;  %s20_s25 = int_to_ptr.hbm [resolvable:$true] %s19_s25 }
   0x4   :  { %s31_s22 = sshll.u32 %s1137_s21, 4  ;;  %s1138_s26 = smov 256   ;;  %s32_s22 = int_to_ptr.vmem [resolvable:$true] %s31_s22 }
   0x5   :  { %s1139_s27 = smov 16   ;;  %s1140_s28 = smov [#allocation2]  }
   0x6   :  { %37 = dma.hbm_to_vmem [thread:$0]  %s30_s20, 4096, %s32_s22, [#allocation6], %s1138_s26, %s1138_s26, %s1139_s27  }
   0x7   :  { %s21_s29 = sshll.u32 %s1140_s28, 4  ;;  %s43_s7 = sshll.u32 %s1196_s2, 4  ;;  %s22_s29 = int_to_ptr.vmem [resolvable:$true] %s21_s29  ;;  %s44_s7 = int_to_ptr.hbm [resolvable:$true] %s43_s7 }
   0x8   :  { %24 = dma.hbm_to_vmem [thread:$0]  %s20_s25, 64, %s22_s29, [#allocation3]  }
   0x9   :  { %s53_s9 = sshll.u32 %s1197_s3, 4  ;;  %s1141_s10 = smov [#allocation7]   ;;  %s54_s9 = int_to_ptr.hbm [resolvable:$true] %s53_s9 }
   0xa   :  { %s45_s11 = sshll.u32 %s1141_s10, 4  ;;  %s1142_s0 = smov [#allocation8]   ;;  %s46_s11 = int_to_ptr.vmem [resolvable:$true] %s45_s11 }
   0xb   :  { %48 = dma.hbm_to_vmem [thread:$0]  %s44_s7, 64, %s46_s11, [#allocation6]  }
   0xc   :  { %s55_s12 = sshll.u32 %s1142_s0, 4  ;;  %s1143_s13 = smov 64   ;;  %s56_s12 = int_to_ptr.vmem [resolvable:$true] %s55_s12 }
   0xd   :  { %s1144_s14 = smov 4  }
   0xe   :  { %61 = dma.hbm_to_vmem [thread:$0]  %s54_s9, 4096, %s56_s12, [#allocation9], %s1143_s13, %s1143_s13, %s1144_s14  }
   0xf   :  { %1129 = dma.done.wait [#allocation3], 64  }
  0x10   :  { %1130 = vsyncadd [#allocation3], 4294967232 }
  0x11   :  { %1131 = dma.done.wait [#allocation6], 4160  }
  0x12   :  { %1132 = vsyncadd [#allocation6], 4294963136 }
  0x13   :  { %1133 = dma.done.wait [#allocation9], 4096  }
  0x14   :  { %1134 = vsyncadd [#allocation9], 4294963200  ;;  %v801_v0 = vld [vmem:[#allocation5 + $0xe8] sm:$0xf]  ;;  %v966_v1 = vld [vmem:[#allocation5 + $0xf4] sm:$0xf0] }
  0x15   :  { %v964_v2 = vld [vmem:[#allocation5 + $0xec] sm:$0xf]  ;;  %v802_v3 = vor.u32 %v966_v1, %v801_v0  ;;  %v803_v4 = vld [vmem:[#allocation5 + $0xf8] sm:$0xf0]  ;;  %v793_v5 = vld [vmem:[#allocation5 + $0xe0] sm:$0xf] }
  0x16   :  { %v965_v6 = vld [vmem:[#allocation5 + $0xec] sm:$0xf0]  ;;  %v806_v7 = vor.u32 %v964_v2, %v803_v4  ;;  %v963_v9 = vld [vmem:[#allocation5 + $0xe4] sm:$0xf]  ;;  %v795_v10 = vld [vmem:[#allocation5 + $0xf0] sm:$0xf0] }
  0x17   :  { %v794_v8 = vor.u32 %v965_v6, %v793_v5  ;;  %v785_v11 = vld [vmem:[#allocation5 + $0xc8] sm:$0xf]  ;;  %309 = vmatpush.bf16.msra.mxu2 %v802_v3  ;;  %v798_v12 = vor.u32 %v963_v9, %v795_v10  ;;  %v962_v13 = vld [vmem:[#allocation5 + $0xd4] sm:$0xf0]  ;;  %v960_v14 = vld [vmem:[#allocation5 + $0xcc] sm:$0xf] }
  0x18   :  { %v787_v15 = vld [vmem:[#allocation5 + $0xd8] sm:$0xf0]  ;;  %322 = vmatpush.bf16.msra.mxu3 %v806_v7  ;;  %v786_v16 = vor.u32 %v962_v13, %v785_v11  ;;  %v777_v18 = vld [vmem:[#allocation5 + $0xc0] sm:$0xf]  ;;  %v961_v19 = vld [vmem:[#allocation5 + $0xcc] sm:$0xf0] }
  0x19   :  { %283 = vmatpush.bf16.msra.mxu0 %v794_v8  ;;  %v790_v17 = vor.u32 %v960_v14, %v787_v15  ;;  %v959_v20 = vld [vmem:[#allocation5 + $0xc4] sm:$0xf]  ;;  %296 = vmatpush.bf16.msra.mxu1 %v798_v12  ;;  %v778_v21 = vor.u32 %v961_v19, %v777_v18  ;;  %v779_v22 = vld [vmem:[#allocation5 + $0xd0] sm:$0xf0]  ;;  %v769_v23 = vld [vmem:[#allocation5 + $0xa8] sm:$0xf] }
  0x1a   :  { %v958_v24 = vld [vmem:[#allocation5 + $0xb4] sm:$0xf0]  ;;  %v782_v25 = vor.u32 %v959_v20, %v779_v22  ;;  %v956_v26 = vld [vmem:[#allocation5 + $0xac] sm:$0xf]  ;;  %v771_v27 = vld [vmem:[#allocation5 + $0xb8] sm:$0xf0] }
  0x1b   :  { %v761_v28 = vld [vmem:[#allocation5 + $0xa0] sm:$0xf]  ;;  %310 = vmatpush.bf16.msra.mxu2 %v786_v16  ;;  %v770_v29 = vor.u32 %v958_v24, %v769_v23  ;;  %v957_v30 = vld [vmem:[#allocation5 + $0xac] sm:$0xf0]  ;;  %v955_v31 = vld [vmem:[#allocation5 + $0xa4] sm:$0xf]  ;;  %v774_v33 = vor.u32 %v956_v26, %v771_v27 }
  0x1c   :  { %v763_v32 = vld [vmem:[#allocation5 + $0xb0] sm:$0xf0]  ;;  %323 = vmatpush.bf16.msra.mxu3 %v790_v17  ;;  %v762_v34 = vor.u32 %v957_v30, %v761_v28  ;;  %v753_v35 = vld [vmem:[#allocation5 + $0x88] sm:$0xf]  ;;  %v954_v36 = vld [vmem:[#allocation5 + $0x94] sm:$0xf0] }
  0x1d   :  { %284 = vmatpush.bf16.msra.mxu0 %v778_v21  ;;  %v952_v37 = vld [vmem:[#allocation5 + $0x8c] sm:$0xf]  ;;  %297 = vmatpush.bf16.msra.mxu1 %v782_v25  ;;  %v766_v38 = vor.u32 %v955_v31, %v763_v32  ;;  %v755_v39 = vld [vmem:[#allocation5 + $0x98] sm:$0xf0]  ;;  %v745_v40 = vld [vmem:[#allocation5 + $0x80] sm:$0xf]  ;;  %v754_v44 = vor.u32 %v954_v36, %v753_v35 }
  0x1e   :  { %v953_v41 = vld [vmem:[#allocation5 + $0x8c] sm:$0xf0]  ;;  %v951_v42 = vld [vmem:[#allocation5 + $0x84] sm:$0xf]  ;;  %v747_v43 = vld [vmem:[#allocation5 + $0x90] sm:$0xf0]  ;;  %v758_v45 = vor.u32 %v952_v37, %v755_v39 }
  0x1f   :  { %311 = vmatpush.bf16.msra.mxu2 %v770_v29  ;;  %v746_v46 = vor.u32 %v953_v41, %v745_v40  ;;  %v737_v47 = vld [vmem:[#allocation5 + $0x68] sm:$0xf]  ;;  %v950_v48 = vld [vmem:[#allocation5 + $0x74] sm:$0xf0]  ;;  %v948_v49 = vld [vmem:[#allocation5 + $0x6c] sm:$0xf]  ;;  %v750_v50 = vor.u32 %v951_v42, %v747_v43 }
  0x20   :  { %324 = vmatpush.bf16.msra.mxu3 %v774_v33  ;;  %v739_v51 = vld [vmem:[#allocation5 + $0x78] sm:$0xf0]  ;;  %v729_v52 = vld [vmem:[#allocation5 + $0x60] sm:$0xf]  ;;  %v949_v53 = vld [vmem:[#allocation5 + $0x6c] sm:$0xf0]  ;;  %v738_v56 = vor.u32 %v950_v48, %v737_v47 }
  0x21   :  { %285 = vmatpush.bf16.msra.mxu0 %v762_v34  ;;  %298 = vmatpush.bf16.msra.mxu1 %v766_v38  ;;  %v947_v54 = vld [vmem:[#allocation5 + $0x64] sm:$0xf]  ;;  %v731_v55 = vld [vmem:[#allocation5 + $0x70] sm:$0xf0]  ;;  %v742_v57 = vor.u32 %v948_v49, %v739_v51  ;;  %v730_v58 = vor.u32 %v949_v53, %v729_v52  ;;  %v721_v59 = vld [vmem:[#allocation5 + $0x48] sm:$0xf] }
  0x22   :  { %v946_v60 = vld [vmem:[#allocation5 + $0x54] sm:$0xf0]  ;;  %v944_v61 = vld [vmem:[#allocation5 + $0x4c] sm:$0xf]  ;;  %v734_v62 = vor.u32 %v947_v54, %v731_v55  ;;  %v723_v63 = vld [vmem:[#allocation5 + $0x58] sm:$0xf0] }
  0x23   :  { %312 = vmatpush.bf16.msra.mxu2 %v754_v44  ;;  %v713_v0 = vld [vmem:[#allocation5 + $0x40] sm:$0xf]  ;;  %v945_v1 = vld [vmem:[#allocation5 + $0x4c] sm:$0xf0]  ;;  %v943_v2 = vld [vmem:[#allocation5 + $0x44] sm:$0xf]  ;;  %v722_v4 = vor.u32 %v946_v60, %v721_v59  ;;  %v726_v5 = vor.u32 %v944_v61, %v723_v63 }
  0x24   :  { %325 = vmatpush.bf16.msra.mxu3 %v758_v45  ;;  %v715_v3 = vld [vmem:[#allocation5 + $0x50] sm:$0xf0]  ;;  %v714_v6 = vor.u32 %v945_v1, %v713_v0  ;;  %v705_v7 = vld [vmem:[#allocation5 + $0x28] sm:$0xf]  ;;  %v942_v8 = vld [vmem:[#allocation5 + $0x34] sm:$0xf0] }
  0x25   :  { %286 = vmatpush.bf16.msra.mxu0 %v746_v46  ;;  %299 = vmatpush.bf16.msra.mxu1 %v750_v50  ;;  %v940_v9 = vld [vmem:[#allocation5 + $0x2c] sm:$0xf]  ;;  %v718_v10 = vor.u32 %v943_v2, %v715_v3  ;;  %v707_v11 = vld [vmem:[#allocation5 + $0x38] sm:$0xf0]  ;;  %v697_v12 = vld [vmem:[#allocation5 + $0x20] sm:$0xf]  ;;  %v706_v16 = vor.u32 %v942_v8, %v705_v7 }
  0x26   :  { %v941_v13 = vld [vmem:[#allocation5 + $0x2c] sm:$0xf0]  ;;  %v939_v14 = vld [vmem:[#allocation5 + $0x24] sm:$0xf]  ;;  %v699_v15 = vld [vmem:[#allocation5 + $0x30] sm:$0xf0]  ;;  %v710_v17 = vor.u32 %v940_v9, %v707_v11 }
  0x27   :  { %313 = vmatpush.bf16.msra.mxu2 %v738_v56  ;;  %v698_v18 = vor.u32 %v941_v13, %v697_v12  ;;  %v689_v19 = vld [vmem:[#allocation5 + $0x8] sm:$0xf]  ;;  %v938_v20 = vld [vmem:[#allocation5 + $0x14] sm:$0xf0]  ;;  %v936_v21 = vld [vmem:[#allocation5 + $0xc] sm:$0xf]  ;;  %v702_v22 = vor.u32 %v939_v14, %v699_v15 }
  0x28   :  { %326 = vmatpush.bf16.msra.mxu3 %v742_v57  ;;  %v691_v23 = vld [vmem:[#allocation5 + $0x18] sm:$0xf0]  ;;  %v681_v24 = vld [vmem:[#allocation5] sm:$0xf]  ;;  %v937_v25 = vld [vmem:[#allocation5 + $0xc] sm:$0xf0]  ;;  %v690_v28 = vor.u32 %v938_v20, %v689_v19 }
  0x29   :  { %287 = vmatpush.bf16.msra.mxu0 %v730_v58  ;;  %300 = vmatpush.bf16.msra.mxu1 %v734_v62  ;;  %v935_v26 = vld [vmem:[#allocation5 + $0x4] sm:$0xf]  ;;  %v683_v27 = vld [vmem:[#allocation5 + $0x10] sm:$0xf0]  ;;  %v694_v29 = vor.u32 %v936_v21, %v691_v23  ;;  %v682_v30 = vor.u32 %v937_v25, %v681_v24  ;;  %v974_v32 = vld [vmem:[#allocation8 + $0x38] sm:$0xff]  ;;  %s1145_s15 = smov [#allocation10]  }
  0x2a   :  { %v686_v31 = vor.u32 %v935_v26, %v683_v27  ;;  %v982_v33 = vld [vmem:[#allocation8 + $0x78] sm:$0xff]  ;;  %v973_v36 = vld [vmem:[#allocation8 + $0x30] sm:$0xff]  ;;  %v972_v40 = vld [vmem:[#allocation8 + $0x28] sm:$0xff]  ;;  %s665_s16 = sshll.u32 %s1145_s15, 4  ;;  %s667_s19 = sshll.u32 %s1199_s5, 4  ;;  %s666_s16 = int_to_ptr.vmem [resolvable:$true] %s665_s16  ;;  %s668_s19 = int_to_ptr.hbm [resolvable:$true] %s667_s19 }
  0x2b   :  { %314 = vmatpush.bf16.msra.mxu2 %v722_v4  ;;  %v80_v34 = vld [vmem:[#allocation2] sm:$0xf]  ;;  %v981_v38 = vld [vmem:[#allocation8 + $0x70] sm:$0xff]  ;;  %v980_v42 = vld [vmem:[#allocation8 + $0x68] sm:$0xff] }
  0x2c   :  { %327 = vmatpush.bf16.msra.mxu3 %v726_v5  ;;  %v990_v35 = vld [vmem:[#allocation8 + $0xb8] sm:$0xff]  ;;  %v989_v39 = vld [vmem:[#allocation8 + $0xb0] sm:$0xff]  ;;  %v988_v43 = vld [vmem:[#allocation8 + $0xa8] sm:$0xff] }
  0x2d   :  { %288 = vmatpush.bf16.msra.mxu0 %v714_v6  ;;  %301 = vmatpush.bf16.msra.mxu1 %v718_v10  ;;  %v998_v37 = vld [vmem:[#allocation8 + $0xf8] sm:$0xff]  ;;  %v997_v41 = vld [vmem:[#allocation8 + $0xf0] sm:$0xff]  ;;  %v971_v44 = vld [vmem:[#allocation8 + $0x20] sm:$0xff] }
  0x2e   :  { %v996_v45 = vld [vmem:[#allocation8 + $0xe8] sm:$0xff]  ;;  %v979_v46 = vld [vmem:[#allocation8 + $0x60] sm:$0xff]  ;;  %v970_v48 = vld [vmem:[#allocation8 + $0x18] sm:$0xff] }
  0x2f   :  { %315 = vmatpush.bf16.msra.mxu2 %v706_v16  ;;  %v987_v47 = vld [vmem:[#allocation8 + $0xa0] sm:$0xff]  ;;  %v978_v50 = vld [vmem:[#allocation8 + $0x58] sm:$0xff]  ;;  %v969_v52 = vld [vmem:[#allocation8 + $0x10] sm:$0xff] }
  0x30   :  { %328 = vmatpush.bf16.msra.mxu3 %v710_v17  ;;  %v995_v49 = vld [vmem:[#allocation8 + $0xe0] sm:$0xff]  ;;  %v986_v51 = vld [vmem:[#allocation8 + $0x98] sm:$0xff]  ;;  %v977_v54 = vld [vmem:[#allocation8 + $0x50] sm:$0xff] }
  0x31   :  { %289 = vmatpush.bf16.msra.mxu0 %v698_v18  ;;  %302 = vmatpush.bf16.msra.mxu1 %v702_v22  ;;  %v994_v53 = vld [vmem:[#allocation8 + $0xd8] sm:$0xff]  ;;  %v968_v55 = vld [vmem:[#allocation8 + $0x8] sm:$0xff]  ;;  %v985_v56 = vld [vmem:[#allocation8 + $0x90] sm:$0xff] }
  0x32   :  { %v993_v57 = vld [vmem:[#allocation8 + $0xd0] sm:$0xff]  ;;  %v976_v58 = vld [vmem:[#allocation8 + $0x48] sm:$0xff]  ;;  %v967_v59 = vld [vmem:[#allocation8] sm:$0xff] }
  0x33   :  { %316 = vmatpush.bf16.msra.mxu2 %v690_v28  ;;  %v984_v60 = vld [vmem:[#allocation8 + $0x88] sm:$0xff]  ;;  %v975_v62 = vld [vmem:[#allocation8 + $0x40] sm:$0xff]  ;;  %v113_v1 = vld [vmem:[#allocation7] sm:$0xf] }
  0x34   :  { %329 = vmatpush.bf16.msra.mxu3 %v694_v29  ;;  %v992_v61 = vld [vmem:[#allocation8 + $0xc8] sm:$0xff]  ;;  %v983_v63 = vld [vmem:[#allocation8 + $0x80] sm:$0xff]  ;;  %v115_v2 = vperm.slane %v113_v1, 0  ;;  %v116_v3 = vperm.slane %v113_v1, 1  ;;  %v117_v8 = vperm.slane %v113_v1, 2  ;;  %v118_v10 = vperm.slane %v113_v1, 3 }
  0x35   :  { %290 = vmatpush.bf16.msra.mxu0 %v682_v30  ;;  %303 = vmatpush.bf16.msra.mxu1 %v686_v31  ;;  %v991_v0 = vld [vmem:[#allocation8 + $0xc0] sm:$0xff]  ;;  %v1008_v30 = vld [vmem:[%s1198_s4] ss:$0 sm:$0xff] }
  0x36   :  { %317 = vmatmul.bf16.vlgmr.msra.gmra.mxu2 %v80_v34 }
  0x37   :  { %330 = vmatmul.bf16.vlgmr.msra.gmra.mxu3 %v80_v34  ;;  %633 = vmatpush.bf16.msrb.mxu2 %v990_v35 }
  0x38   :  { %291 = vmatmul.bf16.vlgmr.msra.gmra.mxu0 %v80_v34  ;;  %304 = vmatmul.bf16.vlgmr.msra.gmra.mxu1 %v80_v34 }
  0x39   :  { %607 = vmatpush.bf16.msrb.mxu0 %v974_v32  ;;  %620 = vmatpush.bf16.msrb.mxu1 %v982_v33 }
  0x3a   :  { %646 = vmatpush.bf16.msrb.mxu3 %v998_v37 }
  0x3b   :  { %634 = vmatpush.bf16.msrb.mxu2 %v989_v39 }
  0x3d   :  { %608 = vmatpush.bf16.msrb.mxu0 %v973_v36  ;;  %621 = vmatpush.bf16.msrb.mxu1 %v981_v38 }
  0x3e   :  { %647 = vmatpush.bf16.msrb.mxu3 %v997_v41 }
  0x3f   :  { %635 = vmatpush.bf16.msrb.mxu2 %v988_v43 }
  0x41   :  { %609 = vmatpush.bf16.msrb.mxu0 %v972_v40  ;;  %622 = vmatpush.bf16.msrb.mxu1 %v980_v42 }
  0x42   :  { %648 = vmatpush.bf16.msrb.mxu3 %v996_v45 }
  0x43   :  { %636 = vmatpush.bf16.msrb.mxu2 %v987_v47 }
  0x45   :  { %610 = vmatpush.bf16.msrb.mxu0 %v971_v44  ;;  %623 = vmatpush.bf16.msrb.mxu1 %v979_v46 }
  0x46   :  { %649 = vmatpush.bf16.msrb.mxu3 %v995_v49 }
  0x47   :  { %637 = vmatpush.bf16.msrb.mxu2 %v986_v51 }
  0x49   :  { %611 = vmatpush.bf16.msrb.mxu0 %v970_v48  ;;  %624 = vmatpush.bf16.msrb.mxu1 %v978_v50 }
  0x4a   :  { %650 = vmatpush.bf16.msrb.mxu3 %v994_v53 }
  0x4b   :  { %638 = vmatpush.bf16.msrb.mxu2 %v985_v56 }
  0x4d   :  { %612 = vmatpush.bf16.msrb.mxu0 %v969_v52  ;;  %625 = vmatpush.bf16.msrb.mxu1 %v977_v54 }
  0x4e   :  { %651 = vmatpush.bf16.msrb.mxu3 %v993_v57 }
  0x4f   :  { %639 = vmatpush.bf16.msrb.mxu2 %v984_v60 }
  0x51   :  { %613 = vmatpush.bf16.msrb.mxu0 %v968_v55  ;;  %626 = vmatpush.bf16.msrb.mxu1 %v976_v58 }
  0x52   :  { %652 = vmatpush.bf16.msrb.mxu3 %v992_v61 }
  0x53   :  { %640 = vmatpush.bf16.msrb.mxu2 %v983_v63 }
  0x55   :  { %614 = vmatpush.bf16.msrb.mxu0 %v967_v59  ;;  %627 = vmatpush.bf16.msrb.mxu1 %v975_v62 }
  0x56   :  { %653 = vmatpush.bf16.msrb.mxu3 %v991_v0 }
  0xb5   :  { %v292_v4 = vpop.f32.mrf.mxu0  ;;  %v305_v6 = vpop.f32.mrf.mxu1 }
  0xb6   :  { %v293_v5 = vadd.f32 %v292_v4, %v115_v2  ;;  %v306_v7 = vadd.f32 %v305_v6, %v116_v3 }
  0xb8   :  { %v335_v9 = vmax.f32 %v293_v5, 0.0  ;;  %v336_v11 = vmax.f32 %v306_v7, 0.0 }
  0xb9   :  { %v318_v13 = vpop.f32.mrf.mxu2 }
  0xba   :  { %v339_v12 = vmul.f32 %v335_v9, %v335_v9  ;;  %v340_v14 = vmul.f32 %v336_v11, %v336_v11  ;;  %v319_v15 = vadd.f32 %v318_v13, %v117_v8  ;;  %v331_v16 = vpop.f32.mrf.mxu3 }
  0xbb   :  { %v332_v18 = vadd.f32 %v331_v16, %v118_v10 }
  0xbc   :  { %v343_v17 = vpack.c.bf16 %v339_v12, %v339_v12  ;;  %v344_v19 = vpack.c.bf16 %v340_v14, %v340_v14  ;;  %v337_v20 = vmax.f32 %v319_v15, 0.0 }
  0xbd   :  { %v294_v21 = vpop.f32.mrf.mxu0  ;;  %v338_v22 = vmax.f32 %v332_v18, 0.0  ;;  %v307_v23 = vpop.f32.mrf.mxu1 }
  0xbe   :  { %615 = vmatmul.bf16.vlgmr.msrb.gmra.mxu0 %v343_v17  ;;  %v341_v24 = vmul.f32 %v337_v20, %v337_v20  ;;  %628 = vmatmul.bf16.vlgmr.msrb.gmra.mxu1 %v344_v19 }
  0xbf   :  { %v342_v25 = vmul.f32 %v338_v22, %v338_v22 }
  0xc0   :  { %v345_v26 = vpack.c.bf16 %v341_v24, %v341_v24 }
  0xc1   :  { %v346_v27 = vpack.c.bf16 %v342_v25, %v342_v25  ;;  %v320_v28 = vpop.f32.mrf.mxu2 }
  0xc2   :  { %v333_v29 = vpop.f32.mrf.mxu3  ;;  %641 = vmatmul.bf16.vlgmr.msrb.gmra.mxu2 %v345_v26 }
  0xc3   :  { %654 = vmatmul.bf16.vlgmr.msrb.gmra.mxu3 %v346_v27 }
 0x13b   :  { %v616_v31 = vpop.f32.mrf.mxu0  ;;  %v629_v32 = vpop.f32.mrf.mxu1 }
 0x13c   :  { %v617_v33 = vadd.f32 %v1008_v30, %v616_v31 }
 0x13e   :  { %v630_v34 = vadd.f32 %v629_v32, %v617_v33 }
 0x143   :  { %v618_v35 = vpop.f32.mrf.mxu0  ;;  %v631_v36 = vpop.f32.mrf.mxu1 }
 0x145   :  { %v642_v37 = vpop.f32.mrf.mxu2 }
 0x146   :  { %v643_v38 = vadd.f32 %v642_v37, %v630_v34  ;;  %v655_v39 = vpop.f32.mrf.mxu3 }
 0x148   :  { %v656_v40 = vadd.f32 %v655_v39, %v643_v38 }
 0x14a   :  { %659 = vst [vmem:[#allocation10] sm:$0xff] %v656_v40 }
 0x14b   :  { %670 = dma.vmem_to_hbm [thread:$0]  %s666_s16, 128, %s668_s19, [#allocation4]  }
 0x14d   :  { %v644_v41 = vpop.f32.mrf.mxu2 }
 0x14e   :  { %v657_v42 = vpop.f32.mrf.mxu3 }
 0x14f   :  { %1135 = dma.done.wait [#allocation4], 128  }
 0x150   :  { %1136 = vsyncadd [#allocation4], 4294967168 }
 0x151   :  { %675 = vsyncpa [#allocation3], 1 }
 0x152   :  { %676 = vsyncpa [#allocation6], 1 }
 0x153   :  { %677 = vsyncpa [#allocation9], 1 }
 0x154   :  { %678 = vsyncpa [#allocation4], 1 }

// kernel: tpu_custom_call.1
= control target key start
LH: loop header
LB: loop body
LE: loop exit
PB: predicated region body
PF: predicated region fallthrough
CT: control target
= control target key end

     0   :  { %10 = vsyncpa [#allocation3], 0  ;;  %s1194_s0 = inlined_call_operand.hbm [shape: bf16[8,128], index: 0, kind: input, shape index: {}]   ;;  %s1195_s1 = inlined_call_operand.hbm [shape: bf16[128,512], index: 1, kind: input, shape index: {}]   ;;  %s1196_s2 = inlined_call_operand.hbm [shape: f32[1,512], index: 2, kind: input, shape index: {}]   ;;  %s1197_s3 = inlined_call_operand.hbm [shape: bf16[512,128], index: 3, kind: input, shape index: {}]   ;;  %s1198_s4 = inlined_call_operand.vmem [shape: f32[1,128], index: 4, kind: input, shape index: {}]   ;;  %s1199_s5 = inlined_call_operand.hbm [shape: f32[8,128], index: 5, kind: output, shape index: {}]  }
   0x1   :  { %11 = vsyncpa [#allocation6], 0 }
   0x2   :  { %12 = vsyncpa [#allocation9], 0  ;;  %s29_s20 = sshll.u32 %s1195_s1, 4  ;;  %s30_s20 = int_to_ptr.hbm [resolvable:$true] %s29_s20 }
   0x3   :  { %13 = vsyncpa [#allocation4], 0  ;;  %s1137_s21 = smov [#allocation5]   ;;  %s19_s25 = sshll.u32 %s1194_s0, 4  ;;  %s20_s25 = int_to_ptr.hbm [resolvable:$true] %s19_s25 }
   0x4   :  { %s31_s22 = sshll.u32 %s1137_s21, 4  ;;  %s1138_s26 = smov 256   ;;  %s32_s22 = int_to_ptr.vmem [resolvable:$true] %s31_s22 }
   0x5   :  { %s1139_s27 = smov 16   ;;  %s1140_s28 = smov [#allocation2]  }
   0x6   :  { %37 = dma.hbm_to_vmem [thread:$0]  %s30_s20, 4096, %s32_s22, [#allocation6], %s1138_s26, %s1138_s26, %s1139_s27  }
   0x7   :  { %s21_s29 = sshll.u32 %s1140_s28, 4  ;;  %s43_s7 = sshll.u32 %s1196_s2, 4  ;;  %s22_s29 = int_to_ptr.vmem [resolvable:$true] %s21_s29  ;;  %s44_s7 = int_to_ptr.hbm [resolvable:$true] %s43_s7 }
   0x8   :  { %24 = dma.hbm_to_vmem [thread:$0]  %s20_s25, 64, %s22_s29, [#allocation3]  }
   0x9   :  { %s53_s9 = sshll.u32 %s1197_s3, 4  ;;  %s1141_s10 = smov [#allocation7]   ;;  %s54_s9 = int_to_ptr.hbm [resolvable:$true] %s53_s9 }
   0xa   :  { %s45_s11 = sshll.u32 %s1141_s10, 4  ;;  %s1142_s0 = smov [#allocation8]   ;;  %s46_s11 = int_to_ptr.vmem [resolvable:$true] %s45_s11 }
   0xb   :  { %48 = dma.hbm_to_vmem [thread:$0]  %s44_s7, 64, %s46_s11, [#allocation6]  }
   0xc   :  { %s55_s12 = sshll.u32 %s1142_s0, 4  ;;  %s1143_s13 = smov 64   ;;  %s56_s12 = int_to_ptr.vmem [resolvable:$true] %s55_s12 }
   0xd   :  { %s1144_s14 = smov 4  }
   0xe   :  { %61 = dma.hbm_to_vmem [thread:$0]  %s54_s9, 4096, %s56_s12, [#allocation9], %s1143_s13, %s1143_s13, %s1144_s14  }
   0xf   :  { %1129 = dma.done.wait [#allocation3], 64  }
  0x10   :  { %1130 = vsyncadd [#allocation3], 4294967232 }
  0x11   :  { %1131 = dma.done.wait [#allocation6], 4160  }
  0x12   :  { %1132 = vsyncadd [#allocation6], 4294963136 }
  0x13   :  { %1133 = dma.done.wait [#allocation9], 4096  }
  0x14   :  { %1134 = vsyncadd [#allocation9], 4294963200  ;;  %v801_v0 = vld [vmem:[#allocation5 + $0xe8] sm:$0xf]  ;;  %v966_v1 = vld [vmem:[#allocation5 + $0xf4] sm:$0xf0] }
  0x15   :  { %v964_v2 = vld [vmem:[#allocation5 + $0xec] sm:$0xf]  ;;  %v802_v3 = vor.u32 %v966_v1, %v801_v0  ;;  %v803_v4 = vld [vmem:[#allocation5 + $0xf8] sm:$0xf0]  ;;  %v793_v5 = vld [vmem:[#allocation5 + $0xe0] sm:$0xf] }
  0x16   :  { %v965_v6 = vld [vmem:[#allocation5 + $0xec] sm:$0xf0]  ;;  %v806_v7 = vor.u32 %v964_v2, %v803_v4  ;;  %v963_v9 = vld [vmem:[#allocation5 + $0xe4] sm:$0xf]  ;;  %v795_v10 = vld [vmem:[#allocation5 + $0xf0] sm:$0xf0] }
  0x17   :  { %v794_v8 = vor.u32 %v965_v6, %v793_v5  ;;  %v785_v11 = vld [vmem:[#allocation5 + $0xc8] sm:$0xf]  ;;  %309 = vmatpush.bf16.msra.mxu2 %v802_v3  ;;  %v798_v12 = vor.u32 %v963_v9, %v795_v10  ;;  %v962_v13 = vld [vmem:[#allocation5 + $0xd4] sm:$0xf0]  ;;  %v960_v14 = vld [vmem:[#allocation5 + $0xcc] sm:$0xf] }
  0x18   :  { %v787_v15 = vld [vmem:[#allocation5 + $0xd8] sm:$0xf0]  ;;  %322 = vmatpush.bf16.msra.mxu3 %v806_v7  ;;  %v786_v16 = vor.u32 %v962_v13, %v785_v11  ;;  %v777_v18 = vld [vmem:[#allocation5 + $0xc0] sm:$0xf]  ;;  %v961_v19 = vld [vmem:[#allocation5 + $0xcc] sm:$0xf0] }
  0x19   :  { %283 = vmatpush.bf16.msra.mxu0 %v794_v8  ;;  %v790_v17 = vor.u32 %v960_v14, %v787_v15  ;;  %v959_v20 = vld [vmem:[#allocation5 + $0xc4] sm:$0xf]  ;;  %296 = vmatpush.bf16.msra.mxu1 %v798_v12  ;;  %v778_v21 = vor.u32 %v961_v19, %v777_v18  ;;  %v779_v22 = vld [vmem:[#allocation5 + $0xd0] sm:$0xf0]  ;;  %v769_v23 = vld [vmem:[#allocation5 + $0xa8] sm:$0xf] }
  0x1a   :  { %v958_v24 = vld [vmem:[#allocation5 + $0xb4] sm:$0xf0]  ;;  %v782_v25 = vor.u32 %v959_v20, %v779_v22  ;;  %v956_v26 = vld [vmem:[#allocation5 + $0xac] sm:$0xf]  ;;  %v771_v27 = vld [vmem:[#allocation5 + $0xb8] sm:$0xf0] }
  0x1b   :  { %v761_v28 = vld [vmem:[#allocation5 + $0xa0] sm:$0xf]  ;;  %310 = vmatpush.bf16.msra.mxu2 %v786_v16  ;;  %v770_v29 = vor.u32 %v958_v24, %v769_v23  ;;  %v957_v30 = vld [vmem:[#allocation5 + $0xac] sm:$0xf0]  ;;  %v955_v31 = vld [vmem:[#allocation5 + $0xa4] sm:$0xf]  ;;  %v774_v33 = vor.u32 %v956_v26, %v771_v27 }
  0x1c   :  { %v763_v32 = vld [vmem:[#allocation5 + $0xb0] sm:$0xf0]  ;;  %323 = vmatpush.bf16.msra.mxu3 %v790_v17  ;;  %v762_v34 = vor.u32 %v957_v30, %v761_v28  ;;  %v753_v35 = vld [vmem:[#allocation5 + $0x88] sm:$0xf]  ;;  %v954_v36 = vld [vmem:[#allocation5 + $0x94] sm:$0xf0] }
  0x1d   :  { %284 = vmatpush.bf16.msra.mxu0 %v778_v21  ;;  %v952_v37 = vld [vmem:[#allocation5 + $0x8c] sm:$0xf]  ;;  %297 = vmatpush.bf16.msra.mxu1 %v782_v25  ;;  %v766_v38 = vor.u32 %v955_v31, %v763_v32  ;;  %v755_v39 = vld [vmem:[#allocation5 + $0x98] sm:$0xf0]  ;;  %v745_v40 = vld [vmem:[#allocation5 + $0x80] sm:$0xf]  ;;  %v754_v44 = vor.u32 %v954_v36, %v753_v35 }
  0x1e   :  { %v953_v41 = vld [vmem:[#allocation5 + $0x8c] sm:$0xf0]  ;;  %v951_v42 = vld [vmem:[#allocation5 + $0x84] sm:$0xf]  ;;  %v747_v43 = vld [vmem:[#allocation5 + $0x90] sm:$0xf0]  ;;  %v758_v45 = vor.u32 %v952_v37, %v755_v39 }
  0x1f   :  { %311 = vmatpush.bf16.msra.mxu2 %v770_v29  ;;  %v746_v46 = vor.u32 %v953_v41, %v745_v40  ;;  %v737_v47 = vld [vmem:[#allocation5 + $0x68] sm:$0xf]  ;;  %v950_v48 = vld [vmem:[#allocation5 + $0x74] sm:$0xf0]  ;;  %v948_v49 = vld [vmem:[#allocation5 + $0x6c] sm:$0xf]  ;;  %v750_v50 = vor.u32 %v951_v42, %v747_v43 }
  0x20   :  { %324 = vmatpush.bf16.msra.mxu3 %v774_v33  ;;  %v739_v51 = vld [vmem:[#allocation5 + $0x78] sm:$0xf0]  ;;  %v729_v52 = vld [vmem:[#allocation5 + $0x60] sm:$0xf]  ;;  %v949_v53 = vld [vmem:[#allocation5 + $0x6c] sm:$0xf0]  ;;  %v738_v56 = vor.u32 %v950_v48, %v737_v47 }
  0x21   :  { %285 = vmatpush.bf16.msra.mxu0 %v762_v34  ;;  %298 = vmatpush.bf16.msra.mxu1 %v766_v38  ;;  %v947_v54 = vld [vmem:[#allocation5 + $0x64] sm:$0xf]  ;;  %v731_v55 = vld [vmem:[#allocation5 + $0x70] sm:$0xf0]  ;;  %v742_v57 = vor.u32 %v948_v49, %v739_v51  ;;  %v730_v58 = vor.u32 %v949_v53, %v729_v52  ;;  %v721_v59 = vld [vmem:[#allocation5 + $0x48] sm:$0xf] }
  0x22   :  { %v946_v60 = vld [vmem:[#allocation5 + $0x54] sm:$0xf0]  ;;  %v944_v61 = vld [vmem:[#allocation5 + $0x4c] sm:$0xf]  ;;  %v734_v62 = vor.u32 %v947_v54, %v731_v55  ;;  %v723_v63 = vld [vmem:[#allocation5 + $0x58] sm:$0xf0] }
  0x23   :  { %312 = vmatpush.bf16.msra.mxu2 %v754_v44  ;;  %v713_v0 = vld [vmem:[#allocation5 + $0x40] sm:$0xf]  ;;  %v945_v1 = vld [vmem:[#allocation5 + $0x4c] sm:$0xf0]  ;;  %v943_v2 = vld [vmem:[#allocation5 + $0x44] sm:$0xf]  ;;  %v722_v4 = vor.u32 %v946_v60, %v721_v59  ;;  %v726_v5 = vor.u32 %v944_v61, %v723_v63 }
  0x24   :  { %325 = vmatpush.bf16.msra.mxu3 %v758_v45  ;;  %v715_v3 = vld [vmem:[#allocation5 + $0x50] sm:$0xf0]  ;;  %v714_v6 = vor.u32 %v945_v1, %v713_v0  ;;  %v705_v7 = vld [vmem:[#allocation5 + $0x28] sm:$0xf]  ;;  %v942_v8 = vld [vmem:[#allocation5 + $0x34] sm:$0xf0] }
  0x25   :  { %286 = vmatpush.bf16.msra.mxu0 %v746_v46  ;;  %299 = vmatpush.bf16.msra.mxu1 %v750_v50  ;;  %v940_v9 = vld [vmem:[#allocation5 + $0x2c] sm:$0xf]  ;;  %v718_v10 = vor.u32 %v943_v2, %v715_v3  ;;  %v707_v11 = vld [vmem:[#allocation5 + $0x38] sm:$0xf0]  ;;  %v697_v12 = vld [vmem:[#allocation5 + $0x20] sm:$0xf]  ;;  %v706_v16 = vor.u32 %v942_v8, %v705_v7 }
  0x26   :  { %v941_v13 = vld [vmem:[#allocation5 + $0x2c] sm:$0xf0]  ;;  %v939_v14 = vld [vmem:[#allocation5 + $0x24] sm:$0xf]  ;;  %v699_v15 = vld [vmem:[#allocation5 + $0x30] sm:$0xf0]  ;;  %v710_v17 = vor.u32 %v940_v9, %v707_v11 }
  0x27   :  { %313 = vmatpush.bf16.msra.mxu2 %v738_v56  ;;  %v698_v18 = vor.u32 %v941_v13, %v697_v12  ;;  %v689_v19 = vld [vmem:[#allocation5 + $0x8] sm:$0xf]  ;;  %v938_v20 = vld [vmem:[#allocation5 + $0x14] sm:$0xf0]  ;;  %v936_v21 = vld [vmem:[#allocation5 + $0xc] sm:$0xf]  ;;  %v702_v22 = vor.u32 %v939_v14, %v699_v15 }
  0x28   :  { %326 = vmatpush.bf16.msra.mxu3 %v742_v57  ;;  %v691_v23 = vld [vmem:[#allocation5 + $0x18] sm:$0xf0]  ;;  %v681_v24 = vld [vmem:[#allocation5] sm:$0xf]  ;;  %v937_v25 = vld [vmem:[#allocation5 + $0xc] sm:$0xf0]  ;;  %v690_v28 = vor.u32 %v938_v20, %v689_v19 }
  0x29   :  { %287 = vmatpush.bf16.msra.mxu0 %v730_v58  ;;  %300 = vmatpush.bf16.msra.mxu1 %v734_v62  ;;  %v935_v26 = vld [vmem:[#allocation5 + $0x4] sm:$0xf]  ;;  %v683_v27 = vld [vmem:[#allocation5 + $0x10] sm:$0xf0]  ;;  %v694_v29 = vor.u32 %v936_v21, %v691_v23  ;;  %v682_v30 = vor.u32 %v937_v25, %v681_v24  ;;  %v974_v32 = vld [vmem:[#allocation8 + $0x38] sm:$0xff]  ;;  %s1145_s15 = smov [#allocation10]  }
  0x2a   :  { %v686_v31 = vor.u32 %v935_v26, %v683_v27  ;;  %v982_v33 = vld [vmem:[#allocation8 + $0x78] sm:$0xff]  ;;  %v973_v36 = vld [vmem:[#allocation8 + $0x30] sm:$0xff]  ;;  %v972_v40 = vld [vmem:[#allocation8 + $0x28] sm:$0xff]  ;;  %s665_s16 = sshll.u32 %s1145_s15, 4  ;;  %s667_s19 = sshll.u32 %s1199_s5, 4  ;;  %s666_s16 = int_to_ptr.vmem [resolvable:$true] %s665_s16  ;;  %s668_s19 = int_to_ptr.hbm [resolvable:$true] %s667_s19 }
  0x2b   :  { %314 = vmatpush.bf16.msra.mxu2 %v722_v4  ;;  %v80_v34 = vld [vmem:[#allocation2] sm:$0xf]  ;;  %v981_v38 = vld [vmem:[#allocation8 + $0x70] sm:$0xff]  ;;  %v980_v42 = vld [vmem:[#allocation8 + $0x68] sm:$0xff] }
  0x2c   :  { %327 = vmatpush.bf16.msra.mxu3 %v726_v5  ;;  %v990_v35 = vld [vmem:[#allocation8 + $0xb8] sm:$0xff]  ;;  %v989_v39 = vld [vmem:[#allocation8 + $0xb0] sm:$0xff]  ;;  %v988_v43 = vld [vmem:[#allocation8 + $0xa8] sm:$0xff] }
  0x2d   :  { %288 = vmatpush.bf16.msra.mxu0 %v714_v6  ;;  %301 = vmatpush.bf16.msra.mxu1 %v718_v10  ;;  %v998_v37 = vld [vmem:[#allocation8 + $0xf8] sm:$0xff]  ;;  %v997_v41 = vld [vmem:[#allocation8 + $0xf0] sm:$0xff]  ;;  %v971_v44 = vld [vmem:[#allocation8 + $0x20] sm:$0xff] }
  0x2e   :  { %v996_v45 = vld [vmem:[#allocation8 + $0xe8] sm:$0xff]  ;;  %v979_v46 = vld [vmem:[#allocation8 + $0x60] sm:$0xff]  ;;  %v970_v48 = vld [vmem:[#allocation8 + $0x18] sm:$0xff] }
  0x2f   :  { %315 = vmatpush.bf16.msra.mxu2 %v706_v16  ;;  %v987_v47 = vld [vmem:[#allocation8 + $0xa0] sm:$0xff]  ;;  %v978_v50 = vld [vmem:[#allocation8 + $0x58] sm:$0xff]  ;;  %v969_v52 = vld [vmem:[#allocation8 + $0x10] sm:$0xff] }
  0x30   :  { %328 = vmatpush.bf16.msra.mxu3 %v710_v17  ;;  %v995_v49 = vld [vmem:[#allocation8 + $0xe0] sm:$0xff]  ;;  %v986_v51 = vld [vmem:[#allocation8 + $0x98] sm:$0xff]  ;;  %v977_v54 = vld [vmem:[#allocation8 + $0x50] sm:$0xff] }
  0x31   :  { %289 = vmatpush.bf16.msra.mxu0 %v698_v18  ;;  %302 = vmatpush.bf16.msra.mxu1 %v702_v22  ;;  %v994_v53 = vld [vmem:[#allocation8 + $0xd8] sm:$0xff]  ;;  %v968_v55 = vld [vmem:[#allocation8 + $0x8] sm:$0xff]  ;;  %v985_v56 = vld [vmem:[#allocation8 + $0x90] sm:$0xff] }
  0x32   :  { %v993_v57 = vld [vmem:[#allocation8 + $0xd0] sm:$0xff]  ;;  %v976_v58 = vld [vmem:[#allocation8 + $0x48] sm:$0xff]  ;;  %v967_v59 = vld [vmem:[#allocation8] sm:$0xff] }
  0x33   :  { %316 = vmatpush.bf16.msra.mxu2 %v690_v28  ;;  %v984_v60 = vld [vmem:[#allocation8 + $0x88] sm:$0xff]  ;;  %v975_v62 = vld [vmem:[#allocation8 + $0x40] sm:$0xff]  ;;  %v113_v1 = vld [vmem:[#allocation7] sm:$0xf] }
  0x34   :  { %329 = vmatpush.bf16.msra.mxu3 %v694_v29  ;;  %v992_v61 = vld [vmem:[#allocation8 + $0xc8] sm:$0xff]  ;;  %v983_v63 = vld [vmem:[#allocation8 + $0x80] sm:$0xff]  ;;  %v115_v2 = vperm.slane %v113_v1, 0  ;;  %v116_v3 = vperm.slane %v113_v1, 1  ;;  %v117_v8 = vperm.slane %v113_v1, 2  ;;  %v118_v10 = vperm.slane %v113_v1, 3 }
  0x35   :  { %290 = vmatpush.bf16.msra.mxu0 %v682_v30  ;;  %303 = vmatpush.bf16.msra.mxu1 %v686_v31  ;;  %v991_v0 = vld [vmem:[#allocation8 + $0xc0] sm:$0xff]  ;;  %v1008_v30 = vld [vmem:[%s1198_s4] ss:$0 sm:$0xff] }
  0x36   :  { %317 = vmatmul.bf16.vlgmr.msra.gmra.mxu2 %v80_v34 }
  0x37   :  { %330 = vmatmul.bf16.vlgmr.msra.gmra.mxu3 %v80_v34  ;;  %633 = vmatpush.bf16.msrb.mxu2 %v990_v35 }
  0x38   :  { %291 = vmatmul.bf16.vlgmr.msra.gmra.mxu0 %v80_v34  ;;  %304 = vmatmul.bf16.vlgmr.msra.gmra.mxu1 %v80_v34 }
  0x39   :  { %607 = vmatpush.bf16.msrb.mxu0 %v974_v32  ;;  %620 = vmatpush.bf16.msrb.mxu1 %v982_v33 }
  0x3a   :  { %646 = vmatpush.bf16.msrb.mxu3 %v998_v37 }
  0x3b   :  { %634 = vmatpush.bf16.msrb.mxu2 %v989_v39 }
  0x3d   :  { %608 = vmatpush.bf16.msrb.mxu0 %v973_v36  ;;  %621 = vmatpush.bf16.msrb.mxu1 %v981_v38 }
  0x3e   :  { %647 = vmatpush.bf16.msrb.mxu3 %v997_v41 }
  0x3f   :  { %635 = vmatpush.bf16.msrb.mxu2 %v988_v43 }
  0x41   :  { %609 = vmatpush.bf16.msrb.mxu0 %v972_v40  ;;  %622 = vmatpush.bf16.msrb.mxu1 %v980_v42 }
  0x42   :  { %648 = vmatpush.bf16.msrb.mxu3 %v996_v45 }
  0x43   :  { %636 = vmatpush.bf16.msrb.mxu2 %v987_v47 }
  0x45   :  { %610 = vmatpush.bf16.msrb.mxu0 %v971_v44  ;;  %623 = vmatpush.bf16.msrb.mxu1 %v979_v46 }
  0x46   :  { %649 = vmatpush.bf16.msrb.mxu3 %v995_v49 }
  0x47   :  { %637 = vmatpush.bf16.msrb.mxu2 %v986_v51 }
  0x49   :  { %611 = vmatpush.bf16.msrb.mxu0 %v970_v48  ;;  %624 = vmatpush.bf16.msrb.mxu1 %v978_v50 }
  0x4a   :  { %650 = vmatpush.bf16.msrb.mxu3 %v994_v53 }
  0x4b   :  { %638 = vmatpush.bf16.msrb.mxu2 %v985_v56 }
  0x4d   :  { %612 = vmatpush.bf16.msrb.mxu0 %v969_v52  ;;  %625 = vmatpush.bf16.msrb.mxu1 %v977_v54 }
  0x4e   :  { %651 = vmatpush.bf16.msrb.mxu3 %v993_v57 }
  0x4f   :  { %639 = vmatpush.bf16.msrb.mxu2 %v984_v60 }
  0x51   :  { %613 = vmatpush.bf16.msrb.mxu0 %v968_v55  ;;  %626 = vmatpush.bf16.msrb.mxu1 %v976_v58 }
  0x52   :  { %652 = vmatpush.bf16.msrb.mxu3 %v992_v61 }
  0x53   :  { %640 = vmatpush.bf16.msrb.mxu2 %v983_v63 }
  0x55   :  { %614 = vmatpush.bf16.msrb.mxu0 %v967_v59  ;;  %627 = vmatpush.bf16.msrb.mxu1 %v975_v62 }
  0x56   :  { %653 = vmatpush.bf16.msrb.mxu3 %v991_v0 }
  0xb5   :  { %v292_v4 = vpop.f32.mrf.mxu0  ;;  %v305_v6 = vpop.f32.mrf.mxu1 }
  0xb6   :  { %v293_v5 = vadd.f32 %v292_v4, %v115_v2  ;;  %v306_v7 = vadd.f32 %v305_v6, %v116_v3 }
  0xb8   :  { %v335_v9 = vmax.f32 %v293_v5, 0.0  ;;  %v336_v11 = vmax.f32 %v306_v7, 0.0 }
  0xb9   :  { %v318_v13 = vpop.f32.mrf.mxu2 }
  0xba   :  { %v339_v12 = vmul.f32 %v335_v9, %v335_v9  ;;  %v340_v14 = vmul.f32 %v336_v11, %v336_v11  ;;  %v319_v15 = vadd.f32 %v318_v13, %v117_v8  ;;  %v331_v16 = vpop.f32.mrf.mxu3 }
  0xbb   :  { %v332_v18 = vadd.f32 %v331_v16, %v118_v10 }
  0xbc   :  { %v343_v17 = vpack.c.bf16 %v339_v12, %v339_v12  ;;  %v344_v19 = vpack.c.bf16 %v340_v14, %v340_v14  ;;  %v337_v20 = vmax.f32 %v319_v15, 0.0 }
  0xbd   :  { %v294_v21 = vpop.f32.mrf.mxu0  ;;  %v338_v22 = vmax.f32 %v332_v18, 0.0  ;;  %v307_v23 = vpop.f32.mrf.mxu1 }
  0xbe   :  { %615 = vmatmul.bf16.vlgmr.msrb.gmra.mxu0 %v343_v17  ;;  %v341_v24 = vmul.f32 %v337_v20, %v337_v20  ;;  %628 = vmatmul.bf16.vlgmr.msrb.gmra.mxu1 %v344_v19 }
  0xbf   :  { %v342_v25 = vmul.f32 %v338_v22, %v338_v22 }
  0xc0   :  { %v345_v26 = vpack.c.bf16 %v341_v24, %v341_v24 }
  0xc1   :  { %v346_v27 = vpack.c.bf16 %v342_v25, %v342_v25  ;;  %v320_v28 = vpop.f32.mrf.mxu2 }
  0xc2   :  { %v333_v29 = vpop.f32.mrf.mxu3  ;;  %641 = vmatmul.bf16.vlgmr.msrb.gmra.mxu2 %v345_v26 }
  0xc3   :  { %654 = vmatmul.bf16.vlgmr.msrb.gmra.mxu3 %v346_v27 }
 0x13b   :  { %v616_v31 = vpop.f32.mrf.mxu0  ;;  %v629_v32 = vpop.f32.mrf.mxu1 }
 0x13c   :  { %v617_v33 = vadd.f32 %v1008_v30, %v616_v31 }
 0x13e   :  { %v630_v34 = vadd.f32 %v629_v32, %v617_v33 }
 0x143   :  { %v618_v35 = vpop.f32.mrf.mxu0  ;;  %v631_v36 = vpop.f32.mrf.mxu1 }
 0x145   :  { %v642_v37 = vpop.f32.mrf.mxu2 }
 0x146   :  { %v643_v38 = vadd.f32 %v642_v37, %v630_v34  ;;  %v655_v39 = vpop.f32.mrf.mxu3 }
 0x148   :  { %v656_v40 = vadd.f32 %v655_v39, %v643_v38 }
 0x14a   :  { %659 = vst [vmem:[#allocation10] sm:$0xff] %v656_v40 }
 0x14b   :  { %670 = dma.vmem_to_hbm [thread:$0]  %s666_s16, 128, %s668_s19, [#allocation4]  }
 0x14d   :  { %v644_v41 = vpop.f32.mrf.mxu2 }
 0x14e   :  { %v657_v42 = vpop.f32.mrf.mxu3 }
 0x14f   :  { %1135 = dma.done.wait [#allocation4], 128  }
 0x150   :  { %1136 = vsyncadd [#allocation4], 4294967168 }
 0x151   :  { %675 = vsyncpa [#allocation3], 1 }
 0x152   :  { %676 = vsyncpa [#allocation6], 1 }
 0x153   :  { %677 = vsyncpa [#allocation9], 1 }
 0x154   :  { %678 = vsyncpa [#allocation4], 1 }

</bundles_post_ra>
